<compile_context>
chip_gen: v5e
topology: v5e:2x2
jax: 0.10.0
libtpu: 0.0.40
codegen_flags: <defaults>
</compile_context>

<pallas_src>
import functools

import jax
import jax.numpy as jnp
from jax.experimental import pallas as pl
from jax.experimental.pallas import tpu as pltpu


def _round_up(x, m):
    return (x + m - 1) // m * m


def _foolbox_kernel(x_ref, waug_ref, negmu2_ref, o_ref, *, l_pad):
    # Single fused MXU matmul: x @ [W | W @ (2*mu')^T] -> [z | z.(2*mu')], f32 accumulate.
    acc = jnp.dot(x_ref[...], waug_ref[...], preferred_element_type=jnp.float32)
    z = acc[:, :l_pad]                                   # (tb, Lp)
    cross2 = acc[:, l_pad:]                              # (tb, Cp) = z @ (2*mu')^T
    z2 = jnp.sum(z * z, axis=-1, keepdims=True)          # (tb, 1)
    # -||z - mu'||^2 = -||z||^2 + 2*z.mu' - ||mu'||^2  (= -squared_distance with bias folded in)
    o_ref[...] = cross2 + negmu2_ref[...] - z2


def _pick_tile_b(batch, d_in, c_pad, x_itemsize):
    # Sublane multiple for the x dtype (f32: 8, bf16: 16).
    sub = 8 if x_itemsize >= 4 else (16 if x_itemsize == 2 else 32)
    # Streaming budget: 2x double-buffered x tile + 2x f32 out tile must fit comfortably
    # under the scoped VMEM limit we request (and v7x's 64 MiB physical VMEM).
    budget = 36 << 20
    per_row = 2 * d_in * x_itemsize + 2 * c_pad * 4
    tile = int(min(budget // per_row, 2048))             # v7x-safe cap at D_in ~ 1k
    tile = min(tile, _round_up(batch, sub))
    tile = max(sub, (tile // sub) * sub)
    return tile


def model_for_foolbox_forward(x_nchw, w, b, mu, *, use_bf16_matmul=True):
    """x_nchw: (B, C, H, W); w: (C*H*W, L); b: (L,); mu: (num_classes, L)."""
    B = x_nchw.shape[0]
    d_in = x_nchw.shape[1] * x_nchw.shape[2] * x_nchw.shape[3]
    latent = w.shape[1]
    num_classes = mu.shape[0]

    # Lane-dense padding of the parameter-side dims only (never the x batch stream).
    l_pad = _round_up(latent, 128)
    c_pad = _round_up(num_classes, 128)

    mxu_dtype = jnp.bfloat16 if use_bf16_matmul else jnp.float32
    x_itemsize = jnp.dtype(mxu_dtype).itemsize

    # Free reshape; no padded HBM copy of x over the batch dim.
    x_flat = x_nchw.reshape(B, d_in).astype(mxu_dtype)

    # ---- Parameter-only preprocessing (hoisted out of the kernel) ------------------
    # Fold the bias into the centers:  ||xW + b - mu||^2 = ||xW - (mu - b)||^2
    # Fuse both matmuls:               W_aug = [W | W @ (2*mu')^T]
    w_f32 = w.astype(jnp.float32)
    mu_shift = mu.astype(jnp.float32) - b.astype(jnp.float32)[None, :]    # mu' = mu - b
    w_lat = jnp.pad(w_f32, ((0, 0), (0, l_pad - latent)))                  # (D, Lp)
    w_cross = jnp.pad(w_f32 @ (2.0 * mu_shift).T,
                      ((0, 0), (0, c_pad - num_classes)))                  # (D, Cp)
    w_aug = jnp.concatenate([w_lat, w_cross], axis=1).astype(mxu_dtype)    # (D, Lp+Cp)
    mu_p = jnp.pad(mu_shift, ((0, c_pad - num_classes), (0, l_pad - latent)))
    negmu2 = -jnp.sum(mu_p * mu_p, axis=-1).reshape(1, c_pad)              # (1, Cp) f32
    # ---------------------------------------------------------------------------------

    tile_b = _pick_tile_b(B, d_in, c_pad, x_itemsize)
    grid = (pl.cdiv(B, tile_b),)

    grid_spec = pltpu.PrefetchScalarGridSpec(
        num_scalar_prefetch=0,
        grid=grid,
        in_specs=[
            # x streams over the batch grid (auto double-buffered / pipelined).
            pl.BlockSpec((tile_b, d_in), lambda i: (i, 0)),
            # Resident parameters: whole array in VMEM, single copy (no double buffering).
            pl.BlockSpec(memory_space=pltpu.MemorySpace.VMEM),   # W_aug
            pl.BlockSpec(memory_space=pltpu.MemorySpace.VMEM),   # -||mu'||^2
        ],
        out_specs=pl.BlockSpec((tile_b, c_pad), lambda i: (i, 0)),
    )

    # Explicit scoped-VMEM request: actual need + headroom (v5e default is only 16 MiB);
    # capped at 48 MiB so it always fits v7x's 64 MiB physical VMEM.
    needed = (2 * tile_b * d_in * x_itemsize          # double-buffered x tile
              + 2 * tile_b * c_pad * 4                # double-buffered out tile
              + w_aug.size * x_itemsize               # resident W_aug (single buffer)
              + c_pad * 4)                            # resident -||mu'||^2
    vmem_limit = int(min(48 << 20, max(32 << 20, needed + (4 << 20))))

    cost = pl.CostEstimate(
        flops=2 * B * d_in * (l_pad + c_pad) + 3 * B * l_pad + 2 * B * c_pad,
        transcendentals=0,
        bytes_accessed=(x_flat.size * x_itemsize + w_aug.size * x_itemsize
                        + negmu2.size * 4 + B * c_pad * 4),
    )

    out_pad = pl.pallas_call(
        functools.partial(_foolbox_kernel, l_pad=l_pad),
        out_shape=jax.ShapeDtypeStruct((B, c_pad), jnp.float32),
        grid_spec=grid_spec,
        compiler_params=pltpu.CompilerParams(
            dimension_semantics=("parallel",),
            vmem_limit_bytes=vmem_limit,
        ),
        cost_estimate=cost,
    )(x_flat, w_aug, negmu2)

    # Strip class padding (padded batch rows of the partial last block are never written).
    return out_pad[:, :num_classes]


if __name__ == "__main__":
    # Small shapes consistent with an image-classifier input.
    B, C_in, H, W_sp = 2, 4, 16, 16
    D_in = C_in * H * W_sp          # 1024
    LATENT = 32
    NUM_CLASSES = 8

    key = jax.random.PRNGKey(0)
    kx, kw, kb, kmu = jax.random.split(key, 4)

    x = jax.random.normal(kx, (B, C_in, H, W_sp), dtype=jnp.float32)
    w = jax.random.normal(kw, (D_in, LATENT), dtype=jnp.float32) * 0.02
    b = jax.random.normal(kb, (LATENT,), dtype=jnp.float32) * 0.01
    mu = jax.random.normal(kmu, (NUM_CLASSES, LATENT), dtype=jnp.float32)

    # Pure-JAX reference: forward(x) = -||model(x) - mu_c||^2.
    z_ref = x.reshape(B, D_in) @ w + b
    ref = -jnp.sum((z_ref[:, None, :] - mu[None, :, :]) ** 2, axis=-1)

    # Strict check on the f32 MXU path.
    out_f32 = jax.block_until_ready(
        model_for_foolbox_forward(x, w, b, mu, use_bf16_matmul=False))
    assert out_f32.shape == (B, NUM_CLASSES)
    assert jnp.allclose(out_f32, ref, rtol=1e-4, atol=1e-3), "f32 mismatch vs reference"

    # Default (bf16 MXU inputs, f32 accumulation): dtype-aware tolerance.
    out_bf16 = jax.block_until_ready(model_for_foolbox_forward(x, w, b, mu))
    assert out_bf16.shape == (B, NUM_CLASSES)
    assert jnp.allclose(out_bf16, ref, rtol=3e-2, atol=1.0), "bf16 mismatch vs reference"

    print("KERNEL_OK")
</pallas_src>

<mosaic_0001>
module attributes {stable_mosaic.version = 11 : i64} {
  func.func @_foolbox_kernel(%arg0: i32, %arg1: memref<8x1024xf32, #tpu.memory_space<vmem>>, %arg2: memref<1024x256xf32, #tpu.memory_space<vmem>>, %arg3: memref<1x128xf32, #tpu.memory_space<vmem>>, %arg4: memref<8x128xf32, #tpu.memory_space<vmem>>) attributes {dimension_semantics = [#tpu.dimension_semantics<parallel>], iteration_bounds = array<i64: 1>, scalar_prefetch = 0 : i64, scratch_operands = 0 : i64, tpu.core_type = #tpu.core_type<tc>, window_params = [{transform_indices = @transform_0, window_bounds = array<i64: 8, 1024>}, {pipeline_mode = #tpu.pipeline_mode<synchronous>, transform_indices = @transform_1, window_bounds = array<i64: 1024, 256>}, {pipeline_mode = #tpu.pipeline_mode<synchronous>, transform_indices = @transform_2, window_bounds = array<i64: 1, 128>}, {transform_indices = @transform_3, window_bounds = array<i64: 8, 128>}]} {
    %c0 = arith.constant 0 : index
    %c0_0 = arith.constant 0 : index
    %0 = vector.load %arg1[%c0, %c0_0] : memref<8x1024xf32, #tpu.memory_space<vmem>>, vector<8x1024xf32>
    %c0_1 = arith.constant 0 : index
    %c0_2 = arith.constant 0 : index
    %1 = vector.load %arg2[%c0_1, %c0_2] : memref<1024x256xf32, #tpu.memory_space<vmem>>, vector<1024x256xf32>
    %cst = arith.constant dense<0.000000e+00> : vector<8x256xf32>
    %2 = tpu.matmul %0, %1, %cst {dimension_numbers = #tpu.dot_dimension_numbers<[1], [0], [0], [1], [0, 0, 1, 1], [], []>} : vector<8x1024xf32>, vector<1024x256xf32>, vector<8x256xf32> -> vector<8x256xf32>
    %3 = vector.extract_strided_slice %2 {offsets = [0, 0], sizes = [8, 128], strides = [1, 1]} : vector<8x256xf32> to vector<8x128xf32>
    %4 = vector.extract_strided_slice %2 {offsets = [0, 128], sizes = [8, 128], strides = [1, 1]} : vector<8x256xf32> to vector<8x128xf32>
    %5 = arith.mulf %3, %3 : vector<8x128xf32>
    %cst_3 = arith.constant dense<0.000000e+00> : vector<8xf32>
    %6 = vector.multi_reduction <add>, %5, %cst_3 [1] : vector<8x128xf32> to vector<8xf32>
    %7 = vector.shape_cast %6 : vector<8xf32> to vector<8x1xf32>
    %c0_4 = arith.constant 0 : index
    %c0_5 = arith.constant 0 : index
    %8 = vector.load %arg3[%c0_4, %c0_5] : memref<1x128xf32, #tpu.memory_space<vmem>>, vector<1x128xf32>
    %9 = vector.broadcast %8 : vector<1x128xf32> to vector<8x128xf32>
    %10 = arith.addf %4, %9 : vector<8x128xf32>
    %11 = vector.broadcast %7 : vector<8x1xf32> to vector<8x128xf32>
    %12 = arith.subf %10, %11 : vector<8x128xf32>
    %c0_6 = arith.constant 0 : index
    %c0_7 = arith.constant 0 : index
    %13 = vector.load %arg4[%c0_6, %c0_7] : memref<8x128xf32, #tpu.memory_space<vmem>>, vector<8x128xf32>
    tpu.vector_store %arg4[%c0_6, %c0_7], %12 {strides = array<i32>} : memref<8x128xf32, #tpu.memory_space<vmem>>, vector<8x128xf32>,
    return
  }
  func.func @transform_0(%arg0: i32) -> (i32, i32) {
    %c0_i32 = arith.constant 0 : i32
    %c0_i32_0 = arith.constant 0 : i32
    return %arg0, %c0_i32 : i32, i32
  }
  func.func @transform_1(%arg0: i32) -> (i32, i32) {
    %c0_i32 = arith.constant 0 : i32
    %c0_i32_0 = arith.constant 0 : i32
    %c0_i32_1 = arith.constant 0 : i32
    return %c0_i32, %c0_i32_0 : i32, i32
  }
  func.func @transform_2(%arg0: i32) -> (i32, i32) {
    %c0_i32 = arith.constant 0 : i32
    %c0_i32_0 = arith.constant 0 : i32
    %c0_i32_1 = arith.constant 0 : i32
    return %c0_i32, %c0_i32_0 : i32, i32
  }
  func.func @transform_3(%arg0: i32) -> (i32, i32) {
    %c0_i32 = arith.constant 0 : i32
    %c0_i32_0 = arith.constant 0 : i32
    return %arg0, %c0_i32 : i32, i32
  }
}

</mosaic_0001>

<bundles_post_ra>
// kernel: tpu_custom_call.1
= control target key start
LH: loop header
LB: loop body
LE: loop exit
PB: predicated region body
PF: predicated region fallthrough
CT: control target
= control target key end

     0   :  { %8 = vsyncpa [#allocation3], 0  ;;  %s857_s0 = inlined_call_operand.hbm [shape: f32[2,1024], index: 0, kind: input, shape index: {}]   ;;  %s858_s1 = inlined_call_operand.hbm [shape: f32[1024,256], index: 1, kind: input, shape index: {}]   ;;  %s859_s2 = inlined_call_operand.vmem [shape: f32[1,128], index: 2, kind: input, shape index: {}]   ;;  %s860_s3 = inlined_call_operand.hbm [shape: f32[2,128], index: 3, kind: output, shape index: {}]  }
   0x1   :  { %9 = vsyncpa [#allocation6], 0 }
   0x2   :  { %10 = vsyncpa [#allocation4], 0 }
   0x3   :  { %14 = vsyncadd [#allocation3], 768  ;;  %s15_s14 = sshll.u32 %s857_s0, 4  ;;  %s786_s15 = smov [#allocation2]   ;;  %s16_s14 = int_to_ptr.hbm [resolvable:$true] %s15_s14 }
   0x4   :  { %s17_s16 = sshll.u32 %s786_s15, 4  ;;  %s28_s19 = sshll.u32 %s858_s1, 4  ;;  %s18_s16 = int_to_ptr.vmem [resolvable:$true] %s17_s16  ;;  %s29_s19 = int_to_ptr.hbm [resolvable:$true] %s28_s19 }
   0x5   :  { %s787_s20 = smov 256   ;;  %s788_s21 = smov 16  }
   0x6   :  { %23 = dma.hbm_to_vmem [thread:$0]  %s16_s14, 256, %s18_s16, [#allocation3], %s787_s20, %s787_s20, %s788_s21  }
   0x7   :  { %s789_s22 = smov [#allocation5]  }
   0x8   :  { %s30_s23 = sshll.u32 %s789_s22, 4  ;;  %s31_s23 = int_to_ptr.vmem [resolvable:$true] %s30_s23 }
   0x9   :  { %36 = dma.hbm_to_vmem [thread:$0]  %s29_s19, 32768, %s31_s23, [#allocation6], %s787_s20, %s787_s20, %s788_s21  }
   0xa   :  { %780 = dma.done.wait [#allocation3], 1024  }
   0xb   :  { %781 = vsyncadd [#allocation3], 4294966272 }
   0xc   :  { %782 = dma.done.wait [#allocation6], 32768  }
   0xd   :  { %783 = vsyncadd [#allocation6], 4294934528  ;;  %v85_v0 = vld [vmem:[#allocation5 + $0xf0] sm:$0xff]  ;;  %v83_v2 = vld [vmem:[#allocation5 + $0xe0] sm:$0xff] }
   0xe   :  { %v149_v1 = vld [vmem:[#allocation5 + $0x2f0] sm:$0xff]  ;;  %350 = vmatpush.msra.mxu0 %v85_v0  ;;  %v147_v4 = vld [vmem:[#allocation5 + $0x2e0] sm:$0xff] }
   0xf   :  { %390 = vmatpush.msra.mxu2 %v149_v1  ;;  %v117_v3 = vld [vmem:[#allocation5 + $0x1f0] sm:$0xff]  ;;  %v115_v7 = vld [vmem:[#allocation5 + $0x1e0] sm:$0xff] }
  0x10   :  { %v181_v5 = vld [vmem:[#allocation5 + $0x3f0] sm:$0xff]  ;;  %370 = vmatpush.msra.mxu1 %v117_v3  ;;  %351 = vmatpush.msra.mxu0 %v83_v2  ;;  %v179_v9 = vld [vmem:[#allocation5 + $0x3e0] sm:$0xff] }
  0x11   :  { %410 = vmatpush.msra.mxu3 %v181_v5  ;;  %v81_v6 = vld [vmem:[#allocation5 + $0xd0] sm:$0xff]  ;;  %391 = vmatpush.msra.mxu2 %v147_v4  ;;  %v79_v11 = vld [vmem:[#allocation5 + $0xc0] sm:$0xff] }
  0x12   :  { %v145_v8 = vld [vmem:[#allocation5 + $0x2d0] sm:$0xff]  ;;  %371 = vmatpush.msra.mxu1 %v115_v7  ;;  %v143_v12 = vld [vmem:[#allocation5 + $0x2c0] sm:$0xff]  ;;  %352 = vmatpush.msra.mxu0 %v81_v6 }
  0x13   :  { %v113_v10 = vld [vmem:[#allocation5 + $0x1d0] sm:$0xff]  ;;  %411 = vmatpush.msra.mxu3 %v179_v9  ;;  %392 = vmatpush.msra.mxu2 %v145_v8  ;;  %v111_v14 = vld [vmem:[#allocation5 + $0x1c0] sm:$0xff] }
  0x14   :  { %v177_v13 = vld [vmem:[#allocation5 + $0x3d0] sm:$0xff]  ;;  %v175_v15 = vld [vmem:[#allocation5 + $0x3c0] sm:$0xff]  ;;  %372 = vmatpush.msra.mxu1 %v113_v10  ;;  %353 = vmatpush.msra.mxu0 %v79_v11 }
  0x15   :  { %412 = vmatpush.msra.mxu3 %v177_v13  ;;  %v77_v16 = vld [vmem:[#allocation5 + $0xb0] sm:$0xff]  ;;  %393 = vmatpush.msra.mxu2 %v143_v12  ;;  %v75_v20 = vld [vmem:[#allocation5 + $0xa0] sm:$0xff] }
  0x16   :  { %v141_v17 = vld [vmem:[#allocation5 + $0x2b0] sm:$0xff]  ;;  %373 = vmatpush.msra.mxu1 %v111_v14  ;;  %v139_v21 = vld [vmem:[#allocation5 + $0x2a0] sm:$0xff]  ;;  %354 = vmatpush.msra.mxu0 %v77_v16 }
  0x17   :  { %v109_v18 = vld [vmem:[#allocation5 + $0x1b0] sm:$0xff]  ;;  %413 = vmatpush.msra.mxu3 %v175_v15  ;;  %394 = vmatpush.msra.mxu2 %v141_v17  ;;  %v107_v22 = vld [vmem:[#allocation5 + $0x1a0] sm:$0xff] }
  0x18   :  { %v173_v19 = vld [vmem:[#allocation5 + $0x3b0] sm:$0xff]  ;;  %v171_v23 = vld [vmem:[#allocation5 + $0x3a0] sm:$0xff]  ;;  %374 = vmatpush.msra.mxu1 %v109_v18  ;;  %355 = vmatpush.msra.mxu0 %v75_v20 }
  0x19   :  { %414 = vmatpush.msra.mxu3 %v173_v19  ;;  %v73_v24 = vld [vmem:[#allocation5 + $0x90] sm:$0xff]  ;;  %395 = vmatpush.msra.mxu2 %v139_v21  ;;  %v71_v28 = vld [vmem:[#allocation5 + $0x80] sm:$0xff] }
  0x1a   :  { %v137_v25 = vld [vmem:[#allocation5 + $0x290] sm:$0xff]  ;;  %375 = vmatpush.msra.mxu1 %v107_v22  ;;  %v135_v29 = vld [vmem:[#allocation5 + $0x280] sm:$0xff]  ;;  %356 = vmatpush.msra.mxu0 %v73_v24 }
  0x1b   :  { %v105_v26 = vld [vmem:[#allocation5 + $0x190] sm:$0xff]  ;;  %415 = vmatpush.msra.mxu3 %v171_v23  ;;  %396 = vmatpush.msra.mxu2 %v137_v25  ;;  %v103_v30 = vld [vmem:[#allocation5 + $0x180] sm:$0xff] }
  0x1c   :  { %v169_v27 = vld [vmem:[#allocation5 + $0x390] sm:$0xff]  ;;  %v167_v31 = vld [vmem:[#allocation5 + $0x380] sm:$0xff]  ;;  %376 = vmatpush.msra.mxu1 %v105_v26  ;;  %357 = vmatpush.msra.mxu0 %v71_v28 }
  0x1d   :  { %416 = vmatpush.msra.mxu3 %v169_v27  ;;  %v69_v32 = vld [vmem:[#allocation5 + $0x70] sm:$0xff]  ;;  %397 = vmatpush.msra.mxu2 %v135_v29  ;;  %v67_v36 = vld [vmem:[#allocation5 + $0x60] sm:$0xff] }
  0x1e   :  { %v133_v33 = vld [vmem:[#allocation5 + $0x270] sm:$0xff]  ;;  %377 = vmatpush.msra.mxu1 %v103_v30  ;;  %v131_v37 = vld [vmem:[#allocation5 + $0x260] sm:$0xff]  ;;  %358 = vmatpush.msra.mxu0 %v69_v32  ;;  %v48_v32 = vld [vmem:[#allocation2 + $0x8] sm:$0xff] }
  0x1f   :  { %v101_v34 = vld [vmem:[#allocation5 + $0x170] sm:$0xff]  ;;  %417 = vmatpush.msra.mxu3 %v167_v31  ;;  %398 = vmatpush.msra.mxu2 %v133_v33  ;;  %v99_v38 = vld [vmem:[#allocation5 + $0x160] sm:$0xff]  ;;  %v50_v33 = vld [vmem:[#allocation2 + $0x18] sm:$0xff]  ;;  %327 = vst [vmem:[#allocation1 + $0x20] ss:$4 sm:$0xff] %v48_v32 }
  0x20   :  { %v165_v35 = vld [vmem:[#allocation5 + $0x370] sm:$0xff]  ;;  %v163_v39 = vld [vmem:[#allocation5 + $0x360] sm:$0xff]  ;;  %378 = vmatpush.msra.mxu1 %v101_v34  ;;  %359 = vmatpush.msra.mxu0 %v67_v36  ;;  %329 = vst [vmem:[#allocation1 + $0x21] ss:$4 sm:$0xff] %v50_v33  ;;  %v142_v32 = vld [vmem:[#allocation5 + $0x2b8] sm:$0xff] }
  0x21   :  { %418 = vmatpush.msra.mxu3 %v165_v35  ;;  %v65_v40 = vld [vmem:[#allocation5 + $0x50] sm:$0xff]  ;;  %399 = vmatpush.msra.mxu2 %v131_v37  ;;  %v63_v44 = vld [vmem:[#allocation5 + $0x40] sm:$0xff]  ;;  %v78_v33 = vld [vmem:[#allocation5 + $0xb8] sm:$0xff] }
  0x22   :  { %v129_v41 = vld [vmem:[#allocation5 + $0x250] sm:$0xff]  ;;  %379 = vmatpush.msra.mxu1 %v99_v38  ;;  %v127_v45 = vld [vmem:[#allocation5 + $0x240] sm:$0xff]  ;;  %360 = vmatpush.msra.mxu0 %v65_v40  ;;  %v52_v38 = vld [vmem:[#allocation2 + $0x28] sm:$0xff] }
  0x23   :  { %v97_v42 = vld [vmem:[#allocation5 + $0x150] sm:$0xff]  ;;  %419 = vmatpush.msra.mxu3 %v163_v39  ;;  %400 = vmatpush.msra.mxu2 %v129_v41  ;;  %v95_v46 = vld [vmem:[#allocation5 + $0x140] sm:$0xff]  ;;  %v54_v41 = vld [vmem:[#allocation2 + $0x38] sm:$0xff]  ;;  %331 = vst [vmem:[#allocation1 + $0x22] ss:$4 sm:$0xff] %v52_v38 }
  0x24   :  { %v161_v43 = vld [vmem:[#allocation5 + $0x350] sm:$0xff]  ;;  %v159_v47 = vld [vmem:[#allocation5 + $0x340] sm:$0xff]  ;;  %380 = vmatpush.msra.mxu1 %v97_v42  ;;  %361 = vmatpush.msra.mxu0 %v63_v44  ;;  %333 = vst [vmem:[#allocation1 + $0x23] ss:$4 sm:$0xff] %v54_v41  ;;  %v172_v38 = vld [vmem:[#allocation5 + $0x3a8] sm:$0xff] }
  0x25   :  { %420 = vmatpush.msra.mxu3 %v161_v43  ;;  %v61_v48 = vld [vmem:[#allocation5 + $0x30] sm:$0xff]  ;;  %401 = vmatpush.msra.mxu2 %v127_v45  ;;  %v59_v52 = vld [vmem:[#allocation5 + $0x20] sm:$0xff]  ;;  %v74_v41 = vld [vmem:[#allocation5 + $0x98] sm:$0xff] }
  0x26   :  { %v125_v49 = vld [vmem:[#allocation5 + $0x230] sm:$0xff]  ;;  %381 = vmatpush.msra.mxu1 %v95_v46  ;;  %v123_v53 = vld [vmem:[#allocation5 + $0x220] sm:$0xff]  ;;  %362 = vmatpush.msra.mxu0 %v61_v48 }
  0x27   :  { %v93_v50 = vld [vmem:[#allocation5 + $0x130] sm:$0xff]  ;;  %421 = vmatpush.msra.mxu3 %v159_v47  ;;  %402 = vmatpush.msra.mxu2 %v125_v49  ;;  %v91_v54 = vld [vmem:[#allocation5 + $0x120] sm:$0xff] }
  0x28   :  { %v157_v51 = vld [vmem:[#allocation5 + $0x330] sm:$0xff]  ;;  %v155_v55 = vld [vmem:[#allocation5 + $0x320] sm:$0xff]  ;;  %382 = vmatpush.msra.mxu1 %v93_v50  ;;  %363 = vmatpush.msra.mxu0 %v59_v52 }
  0x29   :  { %422 = vmatpush.msra.mxu3 %v157_v51  ;;  %v57_v56 = vld [vmem:[#allocation5 + $0x10] sm:$0xff]  ;;  %403 = vmatpush.msra.mxu2 %v123_v53  ;;  %v55_v60 = vld [vmem:[#allocation5] sm:$0xff] }
  0x2a   :  { %v121_v57 = vld [vmem:[#allocation5 + $0x210] sm:$0xff]  ;;  %383 = vmatpush.msra.mxu1 %v91_v54  ;;  %v119_v61 = vld [vmem:[#allocation5 + $0x200] sm:$0xff]  ;;  %364 = vmatpush.msra.mxu0 %v57_v56 }
  0x2b   :  { %v89_v58 = vld [vmem:[#allocation5 + $0x110] sm:$0xff]  ;;  %423 = vmatpush.msra.mxu3 %v155_v55  ;;  %404 = vmatpush.msra.mxu2 %v121_v57  ;;  %v87_v0 = vld [vmem:[#allocation5 + $0x100] sm:$0xff] }
  0x2c   :  { %v153_v59 = vld [vmem:[#allocation5 + $0x310] sm:$0xff]  ;;  %384 = vmatpush.msra.mxu1 %v89_v58  ;;  %v151_v1 = vld [vmem:[#allocation5 + $0x300] sm:$0xff]  ;;  %365 = vmatpush.msra.mxu0 %v55_v60 }
  0x2d   :  { %v213_v62 = vld [vmem:[#allocation5 + $0x4f0] sm:$0xff]  ;;  %424 = vmatpush.msra.mxu3 %v153_v59  ;;  %405 = vmatpush.msra.mxu2 %v119_v61  ;;  %v211_v2 = vld [vmem:[#allocation5 + $0x4e0] sm:$0xff] }
  0x2e   :  { %v277_v63 = vld [vmem:[#allocation5 + $0x6f0] sm:$0xff]  ;;  %430 = vmatpush.msrb.mxu0 %v213_v62  ;;  %v275_v4 = vld [vmem:[#allocation5 + $0x6e0] sm:$0xff]  ;;  %385 = vmatpush.msra.mxu1 %v87_v0 }
  0x2f   :  { %v245_v3 = vld [vmem:[#allocation5 + $0x5f0] sm:$0xff]  ;;  %470 = vmatpush.msrb.mxu2 %v277_v63  ;;  %425 = vmatpush.msra.mxu3 %v151_v1  ;;  %v243_v7 = vld [vmem:[#allocation5 + $0x5e0] sm:$0xff] }
  0x30   :  { %v309_v5 = vld [vmem:[#allocation5 + $0x7f0] sm:$0xff]  ;;  %431 = vmatpush.msrb.mxu0 %v211_v2  ;;  %450 = vmatpush.msrb.mxu1 %v245_v3  ;;  %v307_v9 = vld [vmem:[#allocation5 + $0x7e0] sm:$0xff] }
  0x31   :  { %v209_v6 = vld [vmem:[#allocation5 + $0x4d0] sm:$0xff]  ;;  %v207_v10 = vld [vmem:[#allocation5 + $0x4c0] sm:$0xff]  ;;  %471 = vmatpush.msrb.mxu2 %v275_v4  ;;  %490 = vmatpush.msrb.mxu3 %v309_v5 }
  0x32   :  { %v273_v8 = vld [vmem:[#allocation5 + $0x6d0] sm:$0xff]  ;;  %v271_v12 = vld [vmem:[#allocation5 + $0x6c0] sm:$0xff]  ;;  %432 = vmatpush.msrb.mxu0 %v209_v6  ;;  %451 = vmatpush.msrb.mxu1 %v243_v7 }
  0x33   :  { %v241_v11 = vld [vmem:[#allocation5 + $0x5d0] sm:$0xff]  ;;  %v47_v13 = vld [vmem:[#allocation2] sm:$0xff]  ;;  %472 = vmatpush.msrb.mxu2 %v273_v8  ;;  %491 = vmatpush.msrb.mxu3 %v307_v9 }
  0x34   :  { %v49_v14 = vld [vmem:[#allocation2 + $0x10] sm:$0xff]  ;;  %v51_v16 = vld [vmem:[#allocation2 + $0x20] sm:$0xff]  ;;  %319 = vst [vmem:[#allocation1] ss:$4 sm:$0xff] %v47_v13  ;;  %433 = vmatpush.msrb.mxu0 %v207_v10  ;;  %452 = vmatpush.msrb.mxu1 %v241_v11 }
  0x35   :  { %v305_v15 = vld [vmem:[#allocation5 + $0x7d0] sm:$0xff]  ;;  %v239_v19 = vld [vmem:[#allocation5 + $0x5c0] sm:$0xff]  ;;  %321 = vst [vmem:[#allocation1 + $0x1] ss:$4 sm:$0xff] %v49_v14  ;;  %473 = vmatpush.msrb.mxu2 %v271_v12 }
  0x36   :  { %v53_v17 = vld [vmem:[#allocation2 + $0x30] sm:$0xff]  ;;  %v303_v21 = vld [vmem:[#allocation5 + $0x7c0] sm:$0xff]  ;;  %323 = vst [vmem:[#allocation1 + $0x2] ss:$4 sm:$0xff] %v51_v16  ;;  %492 = vmatpush.msrb.mxu3 %v305_v15  ;;  %453 = vmatpush.msrb.mxu1 %v239_v19  ;;  %v150_v16 = vld [vmem:[#allocation5 + $0x2f8] sm:$0xff] }
  0x37   :  { %v205_v18 = vld [vmem:[#allocation5 + $0x4b0] sm:$0xff]  ;;  %v203_v22 = vld [vmem:[#allocation5 + $0x4a0] sm:$0xff]  ;;  %325 = vst [vmem:[#allocation1 + $0x3] ss:$4 sm:$0xff] %v53_v17  ;;  %v86_v17 = vld [vmem:[#allocation5 + $0xf8] sm:$0xff] }
  0x38   :  { %v269_v20 = vld [vmem:[#allocation5 + $0x6b0] sm:$0xff]  ;;  %434 = vmatpush.msrb.mxu0 %v205_v18  ;;  %v267_v24 = vld [vmem:[#allocation5 + $0x6a0] sm:$0xff]  ;;  %493 = vmatpush.msrb.mxu3 %v303_v21  ;;  %v831_v10 = vld.sshfl [vmem:[#allocation1 + $0x20] sm:$0xff pattern:$0x73625140] }
  0x39   :  { %v237_v23 = vld [vmem:[#allocation5 + $0x5b0] sm:$0xff]  ;;  %474 = vmatpush.msrb.mxu2 %v269_v20  ;;  %v235_v27 = vld [vmem:[#allocation5 + $0x5a0] sm:$0xff]  ;;  %v833_v11 = vld.sshfl [vmem:[#allocation1 + $0x30] sm:$0xff pattern:$0x73625140] }
  0x3a   :  { %v301_v25 = vld [vmem:[#allocation5 + $0x7b0] sm:$0xff]  ;;  %435 = vmatpush.msrb.mxu0 %v203_v22  ;;  %454 = vmatpush.msrb.mxu1 %v237_v23  ;;  %v299_v29 = vld [vmem:[#allocation5 + $0x7a0] sm:$0xff]  ;;  %v182_v18 = vld [vmem:[#allocation5 + $0x3f8] sm:$0xff] }
  0x3b   :  { %v201_v26 = vld [vmem:[#allocation5 + $0x490] sm:$0xff]  ;;  %v199_v30 = vld [vmem:[#allocation5 + $0x480] sm:$0xff]  ;;  %475 = vmatpush.msrb.mxu2 %v267_v24  ;;  %494 = vmatpush.msrb.mxu3 %v301_v25  ;;  %v118_v19 = vld [vmem:[#allocation5 + $0x1f8] sm:$0xff] }
  0x3c   :  { %v265_v28 = vld [vmem:[#allocation5 + $0x690] sm:$0xff]  ;;  %436 = vmatpush.msrb.mxu0 %v201_v26  ;;  %455 = vmatpush.msrb.mxu1 %v235_v27  ;;  %v263_v34 = vld [vmem:[#allocation5 + $0x680] sm:$0xff]  ;;  %v148_v20 = vld [vmem:[#allocation5 + $0x2e8] sm:$0xff] }
  0x3d   :  { %v233_v31 = vld [vmem:[#allocation5 + $0x590] sm:$0xff]  ;;  %476 = vmatpush.msrb.mxu2 %v265_v28  ;;  %495 = vmatpush.msrb.mxu3 %v299_v29  ;;  %v231_v37 = vld [vmem:[#allocation5 + $0x580] sm:$0xff]  ;;  %v84_v21 = vld [vmem:[#allocation5 + $0xe8] sm:$0xff] }
  0x3e   :  { %v297_v35 = vld [vmem:[#allocation5 + $0x790] sm:$0xff]  ;;  %437 = vmatpush.msrb.mxu0 %v199_v30  ;;  %456 = vmatpush.msrb.mxu1 %v233_v31  ;;  %v295_v40 = vld [vmem:[#allocation5 + $0x780] sm:$0xff]  ;;  %v819_v50 = vld.sshfl [vmem:[#allocation1 + $0x10] sm:$0xff pattern:$0x73625140] }
  0x3f   :  { %v197_v36 = vld [vmem:[#allocation5 + $0x470] sm:$0xff]  ;;  %477 = vmatpush.msrb.mxu2 %v263_v34  ;;  %496 = vmatpush.msrb.mxu3 %v297_v35  ;;  %v195_v42 = vld [vmem:[#allocation5 + $0x460] sm:$0xff]  ;;  %v821_v55 = vld.sshfl [vmem:[#allocation1] sm:$0xff pattern:$0x73625140] }
  0x40   :  { %v261_v39 = vld [vmem:[#allocation5 + $0x670] sm:$0xff]  ;;  %438 = vmatpush.msrb.mxu0 %v197_v36  ;;  %457 = vmatpush.msrb.mxu1 %v231_v37  ;;  %v259_v44 = vld [vmem:[#allocation5 + $0x660] sm:$0xff]  ;;  %v180_v22 = vld [vmem:[#allocation5 + $0x3e8] sm:$0xff] }
  0x41   :  { %v229_v43 = vld [vmem:[#allocation5 + $0x570] sm:$0xff]  ;;  %478 = vmatpush.msrb.mxu2 %v261_v39  ;;  %497 = vmatpush.msrb.mxu3 %v295_v40  ;;  %v227_v47 = vld [vmem:[#allocation5 + $0x560] sm:$0xff]  ;;  %v116_v23 = vld [vmem:[#allocation5 + $0x1e8] sm:$0xff] }
  0x42   :  { %v293_v45 = vld [vmem:[#allocation5 + $0x770] sm:$0xff]  ;;  %439 = vmatpush.msrb.mxu0 %v195_v42  ;;  %458 = vmatpush.msrb.mxu1 %v229_v43  ;;  %v291_v49 = vld [vmem:[#allocation5 + $0x760] sm:$0xff]  ;;  %v146_v24 = vld [vmem:[#allocation5 + $0x2d8] sm:$0xff] }
  0x43   :  { %v193_v46 = vld [vmem:[#allocation5 + $0x450] sm:$0xff]  ;;  %479 = vmatpush.msrb.mxu2 %v259_v44  ;;  %498 = vmatpush.msrb.mxu3 %v293_v45  ;;  %v191_v51 = vld [vmem:[#allocation5 + $0x440] sm:$0xff]  ;;  %v82_v25 = vld [vmem:[#allocation5 + $0xd8] sm:$0xff] }
  0x44   :  { %v257_v48 = vld [vmem:[#allocation5 + $0x650] sm:$0xff]  ;;  %440 = vmatpush.msrb.mxu0 %v193_v46  ;;  %459 = vmatpush.msrb.mxu1 %v227_v47  ;;  %v255_v53 = vld [vmem:[#allocation5 + $0x640] sm:$0xff]  ;;  %v178_v26 = vld [vmem:[#allocation5 + $0x3d8] sm:$0xff] }
  0x45   :  { %v225_v52 = vld [vmem:[#allocation5 + $0x550] sm:$0xff]  ;;  %480 = vmatpush.msrb.mxu2 %v257_v48  ;;  %499 = vmatpush.msrb.mxu3 %v291_v49  ;;  %v223_v58 = vld [vmem:[#allocation5 + $0x540] sm:$0xff]  ;;  %v114_v27 = vld [vmem:[#allocation5 + $0x1d8] sm:$0xff] }
  0x46   :  { %v289_v54 = vld [vmem:[#allocation5 + $0x750] sm:$0xff]  ;;  %406 = vmatmul.f32.vlgmr.msra.gmra.mxu2 %v819_v50  ;;  %441 = vmatpush.msrb.mxu0 %v191_v51  ;;  %v287_v60 = vld [vmem:[#allocation5 + $0x740] sm:$0xff]  ;;  %v144_v28 = vld [vmem:[#allocation5 + $0x2c8] sm:$0xff] }
  0x47   :  { %v824_v56 = vld.sshfl [vmem:[#allocation1 + $0x18] sm:$0xff pattern:$0x73625140]  ;;  %460 = vmatpush.msrb.mxu1 %v225_v52  ;;  %481 = vmatpush.msrb.mxu2 %v255_v53  ;;  %v827_v61 = vld.sshfl [vmem:[#allocation1 + $0x8] sm:$0xff pattern:$0x73625140] }
  0x48   :  { %v189_v57 = vld [vmem:[#allocation5 + $0x430] sm:$0xff]  ;;  %500 = vmatpush.msrb.mxu3 %v289_v54  ;;  %366 = vmatmul.f32.vlgmr.msra.gmra.mxu0 %v821_v55  ;;  %v187_v62 = vld [vmem:[#allocation5 + $0x420] sm:$0xff]  ;;  %v80_v29 = vld [vmem:[#allocation5 + $0xc8] sm:$0xff] }
  0x49   :  { %v253_v59 = vld [vmem:[#allocation5 + $0x630] sm:$0xff]  ;;  %426 = vmatmul.f32.vlgmr.msra.gmra.mxu3 %v824_v56  ;;  %442 = vmatpush.msrb.mxu0 %v189_v57  ;;  %v251_v0 = vld [vmem:[#allocation5 + $0x620] sm:$0xff]  ;;  %v176_v30 = vld [vmem:[#allocation5 + $0x3c8] sm:$0xff] }
  0x4a   :  { %v221_v63 = vld [vmem:[#allocation5 + $0x530] sm:$0xff]  ;;  %461 = vmatpush.msrb.mxu1 %v223_v58  ;;  %482 = vmatpush.msrb.mxu2 %v253_v59  ;;  %v219_v3 = vld [vmem:[#allocation5 + $0x520] sm:$0xff]  ;;  %v112_v31 = vld [vmem:[#allocation5 + $0x1c8] sm:$0xff] }
  0x4b   :  { %v285_v1 = vld [vmem:[#allocation5 + $0x730] sm:$0xff]  ;;  %501 = vmatpush.msrb.mxu3 %v287_v60  ;;  %386 = vmatmul.f32.vlgmr.msra.gmra.mxu1 %v827_v61  ;;  %v283_v5 = vld [vmem:[#allocation5 + $0x720] sm:$0xff]  ;;  %v174_v34 = vld [vmem:[#allocation5 + $0x3b8] sm:$0xff] }
  0x4c   :  { %v185_v2 = vld [vmem:[#allocation5 + $0x410] sm:$0xff]  ;;  %443 = vmatpush.msrb.mxu0 %v187_v62  ;;  %462 = vmatpush.msrb.mxu1 %v221_v63  ;;  %v183_v6 = vld [vmem:[#allocation5 + $0x400] sm:$0xff]  ;;  %v110_v35 = vld [vmem:[#allocation5 + $0x1b8] sm:$0xff] }
  0x4d   :  { %v249_v4 = vld [vmem:[#allocation5 + $0x610] sm:$0xff]  ;;  %483 = vmatpush.msrb.mxu2 %v251_v0  ;;  %502 = vmatpush.msrb.mxu3 %v285_v1  ;;  %v247_v8 = vld [vmem:[#allocation5 + $0x600] sm:$0xff]  ;;  %v140_v36 = vld [vmem:[#allocation5 + $0x2a8] sm:$0xff] }
  0x4e   :  { %v217_v7 = vld [vmem:[#allocation5 + $0x510] sm:$0xff]  ;;  %444 = vmatpush.msrb.mxu0 %v185_v2  ;;  %463 = vmatpush.msrb.mxu1 %v219_v3  ;;  %v215_v12 = vld [vmem:[#allocation5 + $0x500] sm:$0xff]  ;;  %v76_v37 = vld [vmem:[#allocation5 + $0xa8] sm:$0xff] }
  0x4f   :  { %v281_v9 = vld [vmem:[#allocation5 + $0x710] sm:$0xff]  ;;  %484 = vmatpush.msrb.mxu2 %v249_v4  ;;  %503 = vmatpush.msrb.mxu3 %v283_v5  ;;  %v279_v13 = vld [vmem:[#allocation5 + $0x700] sm:$0xff]  ;;  %v108_v39 = vld [vmem:[#allocation5 + $0x1a8] sm:$0xff] }
  0x50   :  { %445 = vmatpush.msrb.mxu0 %v183_v6  ;;  %464 = vmatpush.msrb.mxu1 %v217_v7  ;;  %v835_v14 = vld.sshfl [vmem:[#allocation1 + $0x28] sm:$0xff pattern:$0x73625140]  ;;  %v837_v15 = vld.sshfl [vmem:[#allocation1 + $0x38] sm:$0xff pattern:$0x73625140] }
  0x51   :  { %485 = vmatpush.msrb.mxu2 %v247_v8  ;;  %504 = vmatpush.msrb.mxu3 %v281_v9  ;;  %v138_v40 = vld [vmem:[#allocation5 + $0x298] sm:$0xff]  ;;  %v136_v44 = vld [vmem:[#allocation5 + $0x288] sm:$0xff] }
  0x52   :  { %446 = vmatmul.f32.vlgmr.msrb.gmra.mxu0 %v831_v10  ;;  %486 = vmatmul.f32.vlgmr.msrb.gmra.mxu2 %v833_v11  ;;  %v170_v42 = vld [vmem:[#allocation5 + $0x398] sm:$0xff]  ;;  %v72_v45 = vld [vmem:[#allocation5 + $0x88] sm:$0xff] }
  0x53   :  { %465 = vmatpush.msrb.mxu1 %v215_v12  ;;  %505 = vmatpush.msrb.mxu3 %v279_v13  ;;  %v106_v43 = vld [vmem:[#allocation5 + $0x198] sm:$0xff]  ;;  %v168_v46 = vld [vmem:[#allocation5 + $0x388] sm:$0xff] }
  0x54   :  { %466 = vmatmul.f32.vlgmr.msrb.gmra.mxu1 %v835_v14  ;;  %506 = vmatmul.f32.vlgmr.msrb.gmra.mxu3 %v837_v15  ;;  %v104_v47 = vld [vmem:[#allocation5 + $0x188] sm:$0xff]  ;;  %v134_v48 = vld [vmem:[#allocation5 + $0x278] sm:$0xff] }
  0x55   :  { %550 = vmatpush.msra.mxu2 %v150_v16  ;;  %510 = vmatpush.msra.mxu0 %v86_v17  ;;  %v70_v49 = vld [vmem:[#allocation5 + $0x78] sm:$0xff]  ;;  %v132_v53 = vld [vmem:[#allocation5 + $0x268] sm:$0xff] }
  0x56   :  { %570 = vmatpush.msra.mxu3 %v182_v18  ;;  %530 = vmatpush.msra.mxu1 %v118_v19  ;;  %v166_v51 = vld [vmem:[#allocation5 + $0x378] sm:$0xff]  ;;  %v68_v54 = vld [vmem:[#allocation5 + $0x68] sm:$0xff] }
  0x57   :  { %551 = vmatpush.msra.mxu2 %v148_v20  ;;  %511 = vmatpush.msra.mxu0 %v84_v21  ;;  %v102_v52 = vld [vmem:[#allocation5 + $0x178] sm:$0xff]  ;;  %v164_v57 = vld [vmem:[#allocation5 + $0x368] sm:$0xff] }
  0x58   :  { %571 = vmatpush.msra.mxu3 %v180_v22  ;;  %531 = vmatpush.msra.mxu1 %v116_v23  ;;  %v100_v58 = vld [vmem:[#allocation5 + $0x168] sm:$0xff]  ;;  %v130_v59 = vld [vmem:[#allocation5 + $0x258] sm:$0xff] }
  0x59   :  { %552 = vmatpush.msra.mxu2 %v146_v24  ;;  %512 = vmatpush.msra.mxu0 %v82_v25  ;;  %v66_v60 = vld [vmem:[#allocation5 + $0x58] sm:$0xff]  ;;  %v128_v0 = vld [vmem:[#allocation5 + $0x248] sm:$0xff] }
  0x5a   :  { %572 = vmatpush.msra.mxu3 %v178_v26  ;;  %532 = vmatpush.msra.mxu1 %v114_v27  ;;  %v162_v62 = vld [vmem:[#allocation5 + $0x358] sm:$0xff]  ;;  %v64_v1 = vld [vmem:[#allocation5 + $0x48] sm:$0xff] }
  0x5b   :  { %553 = vmatpush.msra.mxu2 %v144_v28  ;;  %513 = vmatpush.msra.mxu0 %v80_v29  ;;  %v98_v63 = vld [vmem:[#allocation5 + $0x158] sm:$0xff]  ;;  %v160_v2 = vld [vmem:[#allocation5 + $0x348] sm:$0xff] }
  0x5c   :  { %573 = vmatpush.msra.mxu3 %v176_v30  ;;  %533 = vmatpush.msra.mxu1 %v112_v31  ;;  %v96_v3 = vld [vmem:[#allocation5 + $0x148] sm:$0xff]  ;;  %v126_v4 = vld [vmem:[#allocation5 + $0x238] sm:$0xff] }
  0x5d   :  { %554 = vmatpush.msra.mxu2 %v142_v32  ;;  %514 = vmatpush.msra.mxu0 %v78_v33  ;;  %v62_v5 = vld [vmem:[#allocation5 + $0x38] sm:$0xff]  ;;  %v124_v8 = vld [vmem:[#allocation5 + $0x228] sm:$0xff] }
  0x5e   :  { %574 = vmatpush.msra.mxu3 %v174_v34  ;;  %534 = vmatpush.msra.mxu1 %v110_v35  ;;  %v158_v6 = vld [vmem:[#allocation5 + $0x338] sm:$0xff]  ;;  %v60_v9 = vld [vmem:[#allocation5 + $0x28] sm:$0xff] }
  0x5f   :  { %555 = vmatpush.msra.mxu2 %v140_v36  ;;  %515 = vmatpush.msra.mxu0 %v76_v37  ;;  %v94_v7 = vld [vmem:[#allocation5 + $0x138] sm:$0xff]  ;;  %v156_v12 = vld [vmem:[#allocation5 + $0x328] sm:$0xff] }
  0x60   :  { %575 = vmatpush.msra.mxu3 %v172_v38  ;;  %535 = vmatpush.msra.mxu1 %v108_v39  ;;  %v92_v13 = vld [vmem:[#allocation5 + $0x128] sm:$0xff]  ;;  %v122_v16 = vld [vmem:[#allocation5 + $0x218] sm:$0xff] }
  0x61   :  { %556 = vmatpush.msra.mxu2 %v138_v40  ;;  %516 = vmatpush.msra.mxu0 %v74_v41  ;;  %v58_v17 = vld [vmem:[#allocation5 + $0x18] sm:$0xff]  ;;  %v120_v20 = vld [vmem:[#allocation5 + $0x208] sm:$0xff] }
  0x62   :  { %576 = vmatpush.msra.mxu3 %v170_v42  ;;  %536 = vmatpush.msra.mxu1 %v106_v43  ;;  %v154_v18 = vld [vmem:[#allocation5 + $0x318] sm:$0xff]  ;;  %v56_v21 = vld [vmem:[#allocation5 + $0x8] sm:$0xff] }
  0x63   :  { %557 = vmatpush.msra.mxu2 %v136_v44  ;;  %517 = vmatpush.msra.mxu0 %v72_v45  ;;  %v90_v19 = vld [vmem:[#allocation5 + $0x118] sm:$0xff]  ;;  %v152_v23 = vld [vmem:[#allocation5 + $0x308] sm:$0xff] }
  0x64   :  { %577 = vmatpush.msra.mxu3 %v168_v46  ;;  %537 = vmatpush.msra.mxu1 %v104_v47  ;;  %v278_v22 = vld [vmem:[#allocation5 + $0x6f8] sm:$0xff]  ;;  %v276_v26 = vld [vmem:[#allocation5 + $0x6e8] sm:$0xff] }
  0x65   :  { %558 = vmatpush.msra.mxu2 %v134_v48  ;;  %518 = vmatpush.msra.mxu0 %v70_v49  ;;  %v214_v24 = vld [vmem:[#allocation5 + $0x4f8] sm:$0xff]  ;;  %v88_v27 = vld [vmem:[#allocation5 + $0x108] sm:$0xff] }
  0x66   :  { %578 = vmatpush.msra.mxu3 %v166_v51  ;;  %538 = vmatpush.msra.mxu1 %v102_v52  ;;  %v310_v25 = vld [vmem:[#allocation5 + $0x7f8] sm:$0xff]  ;;  %v212_v28 = vld [vmem:[#allocation5 + $0x4e8] sm:$0xff] }
  0x67   :  { %559 = vmatpush.msra.mxu2 %v132_v53  ;;  %519 = vmatpush.msra.mxu0 %v68_v54  ;;  %v246_v29 = vld [vmem:[#allocation5 + $0x5f8] sm:$0xff]  ;;  %v308_v31 = vld [vmem:[#allocation5 + $0x7e8] sm:$0xff] }
  0x68   :  { %579 = vmatpush.msra.mxu3 %v164_v57  ;;  %539 = vmatpush.msra.mxu1 %v100_v58  ;;  %v274_v30 = vld [vmem:[#allocation5 + $0x6d8] sm:$0xff]  ;;  %v244_v33 = vld [vmem:[#allocation5 + $0x5e8] sm:$0xff] }
  0x69   :  { %560 = vmatpush.msra.mxu2 %v130_v59  ;;  %520 = vmatpush.msra.mxu0 %v66_v60  ;;  %v210_v32 = vld [vmem:[#allocation5 + $0x4d8] sm:$0xff]  ;;  %v272_v34 = vld [vmem:[#allocation5 + $0x6c8] sm:$0xff] }
  0x6a   :  { %580 = vmatpush.msra.mxu3 %v162_v62  ;;  %540 = vmatpush.msra.mxu1 %v98_v63  ;;  %v306_v35 = vld [vmem:[#allocation5 + $0x7d8] sm:$0xff]  ;;  %v208_v36 = vld [vmem:[#allocation5 + $0x4c8] sm:$0xff] }
  0x6b   :  { %561 = vmatpush.msra.mxu2 %v128_v0  ;;  %521 = vmatpush.msra.mxu0 %v64_v1  ;;  %v242_v37 = vld [vmem:[#allocation5 + $0x5d8] sm:$0xff]  ;;  %v304_v39 = vld [vmem:[#allocation5 + $0x7c8] sm:$0xff] }
  0x6c   :  { %581 = vmatpush.msra.mxu3 %v160_v2  ;;  %541 = vmatpush.msra.mxu1 %v96_v3  ;;  %v270_v38 = vld [vmem:[#allocation5 + $0x6b8] sm:$0xff]  ;;  %v240_v41 = vld [vmem:[#allocation5 + $0x5c8] sm:$0xff] }
  0x6d   :  { %562 = vmatpush.msra.mxu2 %v126_v4  ;;  %522 = vmatpush.msra.mxu0 %v62_v5  ;;  %v206_v40 = vld [vmem:[#allocation5 + $0x4b8] sm:$0xff]  ;;  %v268_v42 = vld [vmem:[#allocation5 + $0x6a8] sm:$0xff] }
  0x6e   :  { %582 = vmatpush.msra.mxu3 %v158_v6  ;;  %542 = vmatpush.msra.mxu1 %v94_v7  ;;  %v302_v43 = vld [vmem:[#allocation5 + $0x7b8] sm:$0xff]  ;;  %v204_v44 = vld [vmem:[#allocation5 + $0x4a8] sm:$0xff] }
  0x6f   :  { %563 = vmatpush.msra.mxu2 %v124_v8  ;;  %523 = vmatpush.msra.mxu0 %v60_v9  ;;  %v238_v45 = vld [vmem:[#allocation5 + $0x5b8] sm:$0xff]  ;;  %v300_v47 = vld [vmem:[#allocation5 + $0x7a8] sm:$0xff] }
  0x70   :  { %583 = vmatpush.msra.mxu3 %v156_v12  ;;  %543 = vmatpush.msra.mxu1 %v92_v13  ;;  %v266_v46 = vld [vmem:[#allocation5 + $0x698] sm:$0xff]  ;;  %v236_v49 = vld [vmem:[#allocation5 + $0x5a8] sm:$0xff] }
  0x71   :  { %564 = vmatpush.msra.mxu2 %v122_v16  ;;  %524 = vmatpush.msra.mxu0 %v58_v17  ;;  %v202_v48 = vld [vmem:[#allocation5 + $0x498] sm:$0xff]  ;;  %v264_v51 = vld [vmem:[#allocation5 + $0x688] sm:$0xff] }
  0x72   :  { %584 = vmatpush.msra.mxu3 %v154_v18  ;;  %544 = vmatpush.msra.mxu1 %v90_v19  ;;  %v298_v52 = vld [vmem:[#allocation5 + $0x798] sm:$0xff]  ;;  %v200_v53 = vld [vmem:[#allocation5 + $0x488] sm:$0xff] }
  0x73   :  { %565 = vmatpush.msra.mxu2 %v120_v20  ;;  %525 = vmatpush.msra.mxu0 %v56_v21  ;;  %v234_v54 = vld [vmem:[#allocation5 + $0x598] sm:$0xff]  ;;  %v296_v58 = vld [vmem:[#allocation5 + $0x788] sm:$0xff] }
  0x74   :  { %585 = vmatpush.msra.mxu3 %v152_v23  ;;  %545 = vmatpush.msra.mxu1 %v88_v27  ;;  %v262_v57 = vld [vmem:[#allocation5 + $0x678] sm:$0xff]  ;;  %v232_v60 = vld [vmem:[#allocation5 + $0x588] sm:$0xff] }
  0x75   :  { %630 = vmatpush.msrb.mxu2 %v278_v22  ;;  %590 = vmatpush.msrb.mxu0 %v214_v24  ;;  %v198_v59 = vld [vmem:[#allocation5 + $0x478] sm:$0xff]  ;;  %v260_v62 = vld [vmem:[#allocation5 + $0x668] sm:$0xff] }
  0x76   :  { %650 = vmatpush.msrb.mxu3 %v310_v25  ;;  %610 = vmatpush.msrb.mxu1 %v246_v29  ;;  %v294_v63 = vld [vmem:[#allocation5 + $0x778] sm:$0xff]  ;;  %v196_v0 = vld [vmem:[#allocation5 + $0x468] sm:$0xff] }
  0x77   :  { %631 = vmatpush.msrb.mxu2 %v276_v26  ;;  %591 = vmatpush.msrb.mxu0 %v212_v28  ;;  %v230_v1 = vld [vmem:[#allocation5 + $0x578] sm:$0xff]  ;;  %v292_v3 = vld [vmem:[#allocation5 + $0x768] sm:$0xff] }
  0x78   :  { %651 = vmatpush.msrb.mxu3 %v308_v31  ;;  %611 = vmatpush.msrb.mxu1 %v244_v33  ;;  %v258_v2 = vld [vmem:[#allocation5 + $0x658] sm:$0xff]  ;;  %v228_v5 = vld [vmem:[#allocation5 + $0x568] sm:$0xff] }
  0x79   :  { %632 = vmatpush.msrb.mxu2 %v274_v30  ;;  %592 = vmatpush.msrb.mxu0 %v210_v32  ;;  %v194_v4 = vld [vmem:[#allocation5 + $0x458] sm:$0xff]  ;;  %v256_v6 = vld [vmem:[#allocation5 + $0x648] sm:$0xff] }
  0x7a   :  { %652 = vmatpush.msrb.mxu3 %v306_v35  ;;  %612 = vmatpush.msrb.mxu1 %v242_v37  ;;  %v290_v7 = vld [vmem:[#allocation5 + $0x758] sm:$0xff]  ;;  %v192_v8 = vld [vmem:[#allocation5 + $0x448] sm:$0xff] }
  0x7b   :  { %633 = vmatpush.msrb.mxu2 %v272_v34  ;;  %593 = vmatpush.msrb.mxu0 %v208_v36  ;;  %v226_v9 = vld [vmem:[#allocation5 + $0x558] sm:$0xff]  ;;  %v288_v13 = vld [vmem:[#allocation5 + $0x748] sm:$0xff] }
  0x7c   :  { %653 = vmatpush.msrb.mxu3 %v304_v39  ;;  %613 = vmatpush.msrb.mxu1 %v240_v41  ;;  %v254_v12 = vld [vmem:[#allocation5 + $0x638] sm:$0xff]  ;;  %v224_v17 = vld [vmem:[#allocation5 + $0x548] sm:$0xff] }
  0x7d   :  { %634 = vmatpush.msrb.mxu2 %v270_v38  ;;  %594 = vmatpush.msrb.mxu0 %v206_v40  ;;  %v190_v16 = vld [vmem:[#allocation5 + $0x438] sm:$0xff]  ;;  %v252_v18 = vld [vmem:[#allocation5 + $0x628] sm:$0xff] }
  0x7e   :  { %654 = vmatpush.msrb.mxu3 %v302_v43  ;;  %614 = vmatpush.msrb.mxu1 %v238_v45  ;;  %v286_v19 = vld [vmem:[#allocation5 + $0x738] sm:$0xff]  ;;  %v188_v20 = vld [vmem:[#allocation5 + $0x428] sm:$0xff] }
  0x7f   :  { %635 = vmatpush.msrb.mxu2 %v268_v42  ;;  %595 = vmatpush.msrb.mxu0 %v204_v44  ;;  %v222_v21 = vld [vmem:[#allocation5 + $0x538] sm:$0xff]  ;;  %v284_v23 = vld [vmem:[#allocation5 + $0x728] sm:$0xff] }
  0x80   :  { %655 = vmatpush.msrb.mxu3 %v300_v47  ;;  %615 = vmatpush.msrb.mxu1 %v236_v49  ;;  %v250_v22 = vld [vmem:[#allocation5 + $0x618] sm:$0xff]  ;;  %v220_v24 = vld [vmem:[#allocation5 + $0x528] sm:$0xff] }
  0x81   :  { %636 = vmatpush.msrb.mxu2 %v266_v46  ;;  %596 = vmatpush.msrb.mxu0 %v202_v48  ;;  %v248_v25 = vld [vmem:[#allocation5 + $0x608] sm:$0xff]  ;;  %v282_v26 = vld [vmem:[#allocation5 + $0x718] sm:$0xff] }
  0x82   :  { %656 = vmatpush.msrb.mxu3 %v298_v52  ;;  %616 = vmatpush.msrb.mxu1 %v234_v54  ;;  %v280_v27 = vld [vmem:[#allocation5 + $0x708] sm:$0xff] }
  0x83   :  { %637 = vmatpush.msrb.mxu2 %v264_v51  ;;  %597 = vmatpush.msrb.mxu0 %v200_v53 }
  0x84   :  { %657 = vmatpush.msrb.mxu3 %v296_v58  ;;  %617 = vmatpush.msrb.mxu1 %v232_v60  ;;  %v707_v58 = vld [vmem:[%s859_s2] ss:$0 sm:$0xff] }
  0x85   :  { %638 = vmatpush.msrb.mxu2 %v262_v57  ;;  %598 = vmatpush.msrb.mxu0 %v198_v59 }
  0x86   :  { %658 = vmatpush.msrb.mxu3 %v294_v63  ;;  %618 = vmatpush.msrb.mxu1 %v230_v1 }
  0x87   :  { %639 = vmatpush.msrb.mxu2 %v260_v62  ;;  %599 = vmatpush.msrb.mxu0 %v196_v0 }
  0x88   :  { %659 = vmatpush.msrb.mxu3 %v292_v3  ;;  %619 = vmatpush.msrb.mxu1 %v228_v5 }
  0x89   :  { %640 = vmatpush.msrb.mxu2 %v258_v2  ;;  %600 = vmatpush.msrb.mxu0 %v194_v4 }
  0x8a   :  { %660 = vmatpush.msrb.mxu3 %v290_v7  ;;  %566 = vmatmul.f32.vlgmr.msra.gmra.mxu2 %v819_v50  ;;  %v186_v50 = vld [vmem:[#allocation5 + $0x418] sm:$0xff] }
  0x8b   :  { %641 = vmatpush.msrb.mxu2 %v256_v6  ;;  %601 = vmatpush.msrb.mxu0 %v192_v8 }
  0x8c   :  { %620 = vmatpush.msrb.mxu1 %v226_v9  ;;  %661 = vmatpush.msrb.mxu3 %v288_v13 }
  0x8d   :  { %642 = vmatpush.msrb.mxu2 %v254_v12  ;;  %526 = vmatmul.f32.vlgmr.msra.gmra.mxu0 %v821_v55  ;;  %v184_v55 = vld [vmem:[#allocation5 + $0x408] sm:$0xff] }
  0x8e   :  { %586 = vmatmul.f32.vlgmr.msra.gmra.mxu3 %v824_v56  ;;  %602 = vmatpush.msrb.mxu0 %v190_v16  ;;  %v218_v56 = vld [vmem:[#allocation5 + $0x518] sm:$0xff] }
  0x8f   :  { %621 = vmatpush.msrb.mxu1 %v224_v17  ;;  %643 = vmatpush.msrb.mxu2 %v252_v18 }
  0x90   :  { %662 = vmatpush.msrb.mxu3 %v286_v19  ;;  %546 = vmatmul.f32.vlgmr.msra.gmra.mxu1 %v827_v61  ;;  %v216_v61 = vld [vmem:[#allocation5 + $0x508] sm:$0xff] }
  0x91   :  { %603 = vmatpush.msrb.mxu0 %v188_v20  ;;  %622 = vmatpush.msrb.mxu1 %v222_v21 }
  0x92   :  { %644 = vmatpush.msrb.mxu2 %v250_v22  ;;  %663 = vmatpush.msrb.mxu3 %v284_v23 }
  0x93   :  { %604 = vmatpush.msrb.mxu0 %v186_v50  ;;  %623 = vmatpush.msrb.mxu1 %v220_v24 }
  0x94   :  { %645 = vmatpush.msrb.mxu2 %v248_v25  ;;  %664 = vmatpush.msrb.mxu3 %v282_v26 }
  0x95   :  { %646 = vmatmul.f32.vlgmr.msrb.gmra.mxu2 %v833_v11  ;;  %605 = vmatpush.msrb.mxu0 %v184_v55 }
  0x96   :  { %624 = vmatpush.msrb.mxu1 %v218_v56  ;;  %665 = vmatpush.msrb.mxu3 %v280_v27 }
  0x97   :  { %606 = vmatmul.f32.vlgmr.msrb.gmra.mxu0 %v831_v10  ;;  %666 = vmatmul.f32.vlgmr.msrb.gmra.mxu3 %v837_v15 }
  0x98   :  { %625 = vmatpush.msrb.mxu1 %v216_v61 }
  0x99   :  { %626 = vmatmul.f32.vlgmr.msrb.gmra.mxu1 %v835_v14 }
  0xc5   :  { %v367_v28 = vpop.f32.mrf.mxu0 }
  0xc8   :  { %v387_v29 = vpop.f32.mrf.mxu1 }
  0xc9   :  { %v388_v30 = vadd.f32 %v387_v29, %v367_v28  ;;  %v407_v31 = vpop.f32.mrf.mxu2 }
  0xcb   :  { %v408_v32 = vadd.f32 %v407_v31, %v388_v30 }
  0xcc   :  { %v427_v33 = vpop.f32.mrf.mxu3 }
  0xcd   :  { %v428_v34 = vadd.f32 %v427_v33, %v408_v32 }
  0xcf   :  { %v447_v35 = vpop.f32.mrf.mxu0 }
  0xd0   :  { %v448_v11 = vadd.f32 %v447_v35, %v428_v34 }
  0xd1   :  { %v467_v36 = vpop.f32.mrf.mxu1 }
  0xd2   :  { %v468_v37 = vadd.f32 %v467_v36, %v448_v11 }
  0xd5   :  { %v487_v38 = vpop.f32.mrf.mxu2 }
  0xd6   :  { %v488_v39 = vadd.f32 %v487_v38, %v468_v37 }
  0xd7   :  { %v507_v10 = vpop.f32.mrf.mxu3 }
  0xd8   :  { %v508_v40 = vadd.f32 %v507_v10, %v488_v39 }
  0xda   :  { %v670_v15 = vmul.f32 %v508_v40, %v508_v40 }
  0xdc   :  { %671 = vadd.xlane.f32.xlu0 %v670_v15 }
 0x10a   :  { %v527_v42 = vpop.f32.mrf.mxu0 }
 0x10d   :  { %v547_v41 = vpop.f32.mrf.mxu1  ;;  %v567_v43 = vpop.f32.mrf.mxu2 }
 0x10e   :  { %v548_v14 = vadd.f32 %v547_v41, %v527_v42 }
 0x110   :  { %v568_v44 = vadd.f32 %v567_v43, %v548_v14 }
 0x111   :  { %v587_v45 = vpop.f32.mrf.mxu3 }
 0x112   :  { %v588_v46 = vadd.f32 %v587_v45, %v568_v44 }
 0x114   :  { %v607_v47 = vpop.f32.mrf.mxu0 }
 0x115   :  { %v608_v48 = vadd.f32 %v607_v47, %v588_v46 }
 0x116   :  { %v627_v49 = vpop.f32.mrf.mxu1 }
 0x117   :  { %v628_v51 = vadd.f32 %v627_v49, %v608_v48 }
 0x118   :  { %v647_v52 = vpop.f32.mrf.mxu2 }
 0x119   :  { %v648_v53 = vadd.f32 %v647_v52, %v628_v51 }
 0x11a   :  { %v667_v54 = vpop.f32.mrf.mxu3 }
 0x11b   :  { %v668_v57 = vadd.f32 %v667_v54, %v648_v53 }
 0x11d   :  { %v677_v59 = vadd.f32 %v707_v58, %v668_v57 }
 0x14f   :  { %v672_v60 = vpop.xlane.xlu0 %671 }
 0x150   :  { %v678_v62 = vsub.f32 %v677_v59, %v672_v60 }
 0x152   :  { %679 = vst [vmem:[#allocation7] sm:$0xff] %v678_v62 }
 0x153   :  { %683 = vsyncadd [#allocation4], 96  ;;  %s686_s26 = sshll.u32 %s860_s3, 4  ;;  %s790_s27 = smov [#allocation7]   ;;  %s687_s26 = int_to_ptr.hbm [resolvable:$true] %s686_s26 }
 0x154   :  { %s684_s28 = sshll.u32 %s790_s27, 4  ;;  %s791_s29 = smov 32   ;;  %s685_s28 = int_to_ptr.vmem [resolvable:$true] %s684_s28 }
 0x155   :  { %s792_s30 = smov 2  }
 0x156   :  { %692 = dma.vmem_to_hbm [thread:$0]  %s685_s28, 32, %s687_s26, [#allocation4], %s791_s29, %s791_s29, %s792_s30  }
 0x157   :  { %784 = dma.done.wait [#allocation4], 128  }
 0x158   :  { %785 = vsyncadd [#allocation4], 4294967168 }
 0x159   :  { %697 = vsyncpa [#allocation3], 1 }
 0x15a   :  { %698 = vsyncpa [#allocation6], 1 }
 0x15b   :  { %699 = vsyncpa [#allocation4], 1 }

</bundles_post_ra>
